<compile_context>
chip_gen: v7x
topology: tpu7x:2x2x1
jax: 0.10.0
libtpu: 0.0.40
codegen_flags: <defaults>
</compile_context>

<pallas_src>
import math
import numpy as np
import jax
import jax.numpy as jnp
from jax.experimental import pallas as pl
from jax.experimental.pallas import tpu as pltpu

LANES = 128


def _round_up(a, m):
    return (a + m - 1) // m * m


def _cdiv(a, b):
    return -(-a // b)


# ----------------------------------------------------------------------------
# Deterministic orthogonal init (numpy replica of baselines_orthogonal_)
# ----------------------------------------------------------------------------
def baselines_orthogonal(shape, gain, rng):
    rows = shape[0]
    cols = int(np.prod(shape)) // rows
    flattened = rng.normal(0.0, 1.0, (cols, rows))
    u, _, v = np.linalg.svd(flattened, full_matrices=False)
    q = u if u.shape == (cols, rows) else v
    assert q.shape == (cols, rows)
    q = q.transpose()
    assert q.shape[0] == shape[0]
    q = q.reshape(shape)
    return (q * gain).astype(np.float32)


# ----------------------------------------------------------------------------
# Pallas kernel: fused latent MLP + packed mean head -> one lane-dense slab.
#
#   slab[:, :indim]            = tanh(x @ Wl + bl)          (latent)
#   slab[:, indim:indim+nact]  = latent @ Wm + bm           (mean)
#   slab[:, indim+nact:]       = 0                          (lane padding)
#
# The packing needs no shuffles: Wm's output columns were pre-shifted to lanes
# [indim : indim+nact] at parameter-prep time, and the latent's lanes in that
# range are exactly tanh(0) = 0, so a single f32 add performs the pack.
# ----------------------------------------------------------------------------
def normal_actor_kernel(x_ref, wl_ref, bl_ref, wm_ref, bm_ref, slab_ref):
    # latent: bf16 MXU matmul with f32 accumulate; bias add + tanh in f32.
    latent_f32 = jnp.tanh(
        jnp.dot(x_ref[...], wl_ref[...], preferred_element_type=jnp.float32)
        + bl_ref[...])                                     # (TB, slab_w) f32

    # mean head, output columns pre-shifted into the free lanes of the slab.
    latent_lo = latent_f32.astype(wm_ref.dtype)
    mean_packed = (
        jnp.dot(latent_lo, wm_ref[...], preferred_element_type=jnp.float32)
        + bm_ref[...])                                     # (TB, slab_w) f32

    slab_ref[...] = (latent_f32 + mean_packed).astype(slab_ref.dtype)


# ----------------------------------------------------------------------------
# One-time parameter preparation (run once, NOT every RL step)
# ----------------------------------------------------------------------------
def prepare_normal_actor_params(w_latent, b_latent, w_mean, b_mean, logstd,
                                compute_dtype=jnp.bfloat16):
    """w_latent: (obs, indim), w_mean: (indim, nact) -- pre-transposed."""
    obs, indim = w_latent.shape
    nact = w_mean.shape[1]
    slab_w = _round_up(indim + nact, LANES)    # lane-dense output width

    wl = jnp.zeros((obs, slab_w), compute_dtype).at[:, :indim].set(
        jnp.asarray(w_latent, compute_dtype))
    bl = jnp.zeros((1, slab_w), jnp.float32).at[:, :indim].set(
        jnp.asarray(b_latent, jnp.float32).reshape(1, indim))
    # mean head packed: its output columns live at lanes [indim : indim+nact]
    wm = jnp.zeros((slab_w, slab_w), compute_dtype).at[
        :indim, indim:indim + nact].set(jnp.asarray(w_mean, compute_dtype))
    bm = jnp.zeros((1, slab_w), jnp.float32).at[:, indim:indim + nact].set(
        jnp.asarray(b_mean, jnp.float32).reshape(1, nact))
    # std is batch-constant: exp(logstd).  (The reference's exp(mean*0+logstd)
    # NaN/Inf-propagation-from-mean quirk is intentionally dropped.)
    std_row = jnp.exp(jnp.asarray(logstd, jnp.float32).reshape(1, nact))
    return dict(wl=wl, bl=bl, wm=wm, bm=bm, std_row=std_row,
                obs=obs, indim=indim, nact=nact, slab_w=slab_w)


# ----------------------------------------------------------------------------
# Per-step forward
# ----------------------------------------------------------------------------
def normal_actor_forward(x, params):
    """x: (B, obs) -> (mean (B,nact), std (B,nact), latent (B,indim))."""
    wl, bl, wm, bm = params["wl"], params["bl"], params["wm"], params["bm"]
    obs, indim, nact, slab_w = (params["obs"], params["indim"],
                                params["nact"], params["slab_w"])
    dtype = wl.dtype
    itm = dtype.itemsize
    B = x.shape[0]

    # n_steps-first batch tiling: >= 2 grid steps (v7x megacore + pipeline
    # depth), TB ~<= 1024 rows (HBM-roofline plateau), padding <= 2*(sub-1).
    sub = 16 if itm < 4 else 8            # sublane packing for sub-32-bit dtypes
    n_steps = max(2, _cdiv(B, 1024))
    TB = _round_up(_cdiv(B, n_steps), sub)
    B_p = n_steps * TB

    x_c = jnp.asarray(x, dtype)
    x_p = x_c if B_p == B else jnp.zeros((B_p, obs), dtype).at[:B, :].set(x_c)

    batch_spec = lambda w: pl.BlockSpec((TB, w), lambda b: (b, 0))
    resident = lambda a: pl.BlockSpec(a.shape, lambda b: (0, 0))  # VMEM-resident

    cost = pl.CostEstimate(
        flops=2 * B_p * slab_w * (obs + slab_w),
        transcendentals=B_p * slab_w,                       # tanh, padded lanes
        bytes_accessed=(B_p * obs * itm                     # x
                        + (obs + slab_w) * slab_w * itm     # wl, wm
                        + 2 * slab_w * 4                    # bl, bm (f32)
                        + B_p * slab_w * itm))              # output slab

    slab = pl.pallas_call(
        normal_actor_kernel,
        out_shape=jax.ShapeDtypeStruct((B_p, slab_w), dtype),
        grid=(n_steps,),
        in_specs=[batch_spec(obs),            # x: new batch tile per step
                  resident(wl), resident(bl), resident(wm), resident(bm)],
        out_specs=batch_spec(slab_w),
        compiler_params=pltpu.CompilerParams(
            dimension_semantics=("parallel",)),   # v7x: shard batch over 2 TCs
        cost_estimate=cost,
    )(x_p, wl, bl, wm, bm)

    latent = slab[:B, :indim]
    mean = slab[:B, indim:indim + nact]
    std = jnp.broadcast_to(params["std_row"], (B, nact))
    return mean, std, latent


# ----------------------------------------------------------------------------
# Pure-JAX f32 reference for verification
# ----------------------------------------------------------------------------
def normal_actor_ref(x, w_latent, b_latent, w_mean, b_mean, logstd):
    latent = jnp.tanh(x @ w_latent + b_latent)
    mean = latent @ w_mean + b_mean
    std = jnp.exp(mean * 0.0 + logstd)
    return mean, std, latent


if __name__ == "__main__":
    # Small shapes consistent with the module: obs_dim=32, indim=64, nact=4
    B, OBS, INDIM, NACT = 8, 32, 64, 4

    # Deterministic parameter init (mirrors reset_parameter gains)
    rng = np.random.RandomState(0)
    wl_t = baselines_orthogonal((INDIM, OBS), gain=float(math.sqrt(2)), rng=rng)
    w_latent = jnp.asarray(wl_t.T)                      # (OBS, INDIM)
    b_latent = jnp.zeros((1, INDIM), jnp.float32)
    wm_t = baselines_orthogonal((NACT, INDIM), gain=0.01, rng=rng)
    w_mean = jnp.asarray(wm_t.T)                        # (INDIM, NACT)
    b_mean = jnp.zeros((1, NACT), jnp.float32)
    logstd = jnp.zeros((1, NACT), jnp.float32)          # nn.Parameter(zeros)

    # Deterministic input
    x = jax.random.normal(jax.random.PRNGKey(0), (B, OBS), dtype=jnp.float32)

    params = prepare_normal_actor_params(
        w_latent, b_latent, w_mean, b_mean, logstd)     # one-time prep
    fwd = jax.jit(lambda inp: normal_actor_forward(inp, params))

    mean, std, latent = jax.block_until_ready(fwd(x))

    mean_r, std_r, latent_r = normal_actor_ref(
        x, w_latent, b_latent, w_mean, b_mean, logstd)

    assert mean.shape == (B, NACT) and std.shape == (B, NACT)
    assert latent.shape == (B, INDIM)
    # bf16 MXU operands / bf16 outputs -> compare against the f32 reference at
    # bf16-level tolerance (tanh-bounded latent, tiny gain-0.01 mean head).
    np.testing.assert_allclose(np.asarray(mean.astype(jnp.float32)),
                               np.asarray(mean_r), rtol=3e-2, atol=3e-2)
    np.testing.assert_allclose(np.asarray(latent.astype(jnp.float32)),
                               np.asarray(latent_r), rtol=3e-2, atol=3e-2)
    np.testing.assert_allclose(np.asarray(std), np.asarray(std_r),
                               rtol=1e-6, atol=1e-6)

    # TODO(synk): torch.distributions.Normal object itself has no Pallas
    # equivalent; the kernel/wrapper return its sufficient statistics
    # (mean, std) instead.
    print("KERNEL_OK")
</pallas_src>

<mosaic_0001>
module attributes {stable_mosaic.version = 11 : i64} {
  func.func @normal_actor_kernel(%arg0: i32, %arg1: memref<16x32xbf16, #tpu.memory_space<vmem>>, %arg2: memref<32x128xbf16, #tpu.memory_space<vmem>>, %arg3: memref<1x128xf32, #tpu.memory_space<vmem>>, %arg4: memref<128x128xbf16, #tpu.memory_space<vmem>>, %arg5: memref<1x128xf32, #tpu.memory_space<vmem>>, %arg6: memref<16x128xbf16, #tpu.memory_space<vmem>>) attributes {dimension_semantics = [#tpu.dimension_semantics<parallel>], iteration_bounds = array<i64: 2>, scalar_prefetch = 0 : i64, scratch_operands = 0 : i64, tpu.core_type = #tpu.core_type<tc>, window_params = [{transform_indices = @transform_0, window_bounds = array<i64: 16, 32>}, {pipeline_mode = #tpu.pipeline_mode<synchronous>, transform_indices = @transform_1, window_bounds = array<i64: 32, 128>}, {pipeline_mode = #tpu.pipeline_mode<synchronous>, transform_indices = @transform_2, window_bounds = array<i64: 1, 128>}, {pipeline_mode = #tpu.pipeline_mode<synchronous>, transform_indices = @transform_3, window_bounds = array<i64: 128, 128>}, {pipeline_mode = #tpu.pipeline_mode<synchronous>, transform_indices = @transform_4, window_bounds = array<i64: 1, 128>}, {transform_indices = @transform_5, window_bounds = array<i64: 16, 128>}]} {
    %c0 = arith.constant 0 : index
    %c0_0 = arith.constant 0 : index
    %0 = vector.load %arg1[%c0, %c0_0] : memref<16x32xbf16, #tpu.memory_space<vmem>>, vector<16x32xbf16>
    %c0_1 = arith.constant 0 : index
    %c0_2 = arith.constant 0 : index
    %1 = vector.load %arg2[%c0_1, %c0_2] : memref<32x128xbf16, #tpu.memory_space<vmem>>, vector<32x128xbf16>
    %cst = arith.constant dense<0.000000e+00> : vector<16x128xf32>
    %2 = tpu.matmul %0, %1, %cst {dimension_numbers = #tpu.dot_dimension_numbers<[1], [0], [0], [1], [0, 0, 1, 1], [], []>} : vector<16x32xbf16>, vector<32x128xbf16>, vector<16x128xf32> -> vector<16x128xf32>
    %c0_3 = arith.constant 0 : index
    %c0_4 = arith.constant 0 : index
    %3 = vector.load %arg3[%c0_3, %c0_4] : memref<1x128xf32, #tpu.memory_space<vmem>>, vector<1x128xf32>
    %4 = vector.broadcast %3 : vector<1x128xf32> to vector<16x128xf32>
    %5 = arith.addf %2, %4 : vector<16x128xf32>
    %6 = math.tanh %5 : vector<16x128xf32>
    %7 = arith.truncf %6 : vector<16x128xf32> to vector<16x128xbf16>
    %c0_5 = arith.constant 0 : index
    %c0_6 = arith.constant 0 : index
    %8 = vector.load %arg4[%c0_5, %c0_6] : memref<128x128xbf16, #tpu.memory_space<vmem>>, vector<128x128xbf16>
    %cst_7 = arith.constant dense<0.000000e+00> : vector<16x128xf32>
    %9 = tpu.matmul %7, %8, %cst_7 {dimension_numbers = #tpu.dot_dimension_numbers<[1], [0], [0], [1], [0, 0, 1, 1], [], []>} : vector<16x128xbf16>, vector<128x128xbf16>, vector<16x128xf32> -> vector<16x128xf32>
    %c0_8 = arith.constant 0 : index
    %c0_9 = arith.constant 0 : index
    %10 = vector.load %arg5[%c0_8, %c0_9] : memref<1x128xf32, #tpu.memory_space<vmem>>, vector<1x128xf32>
    %11 = vector.broadcast %10 : vector<1x128xf32> to vector<16x128xf32>
    %12 = arith.addf %9, %11 : vector<16x128xf32>
    %13 = arith.addf %6, %12 : vector<16x128xf32>
    %14 = arith.truncf %13 : vector<16x128xf32> to vector<16x128xbf16>
    %c0_10 = arith.constant 0 : index
    %c0_11 = arith.constant 0 : index
    %15 = vector.load %arg6[%c0_10, %c0_11] : memref<16x128xbf16, #tpu.memory_space<vmem>>, vector<16x128xbf16>
    tpu.vector_store %arg6[%c0_10, %c0_11], %14 {strides = array<i32>} : memref<16x128xbf16, #tpu.memory_space<vmem>>, vector<16x128xbf16>,
    return
  }
  func.func @transform_0(%arg0: i32) -> (i32, i32) {
    %c0_i32 = arith.constant 0 : i32
    %c0_i32_0 = arith.constant 0 : i32
    return %arg0, %c0_i32 : i32, i32
  }
  func.func @transform_1(%arg0: i32) -> (i32, i32) {
    %c0_i32 = arith.constant 0 : i32
    %c0_i32_0 = arith.constant 0 : i32
    %c0_i32_1 = arith.constant 0 : i32
    return %c0_i32, %c0_i32_0 : i32, i32
  }
  func.func @transform_2(%arg0: i32) -> (i32, i32) {
    %c0_i32 = arith.constant 0 : i32
    %c0_i32_0 = arith.constant 0 : i32
    %c0_i32_1 = arith.constant 0 : i32
    return %c0_i32, %c0_i32_0 : i32, i32
  }
  func.func @transform_3(%arg0: i32) -> (i32, i32) {
    %c0_i32 = arith.constant 0 : i32
    %c0_i32_0 = arith.constant 0 : i32
    %c0_i32_1 = arith.constant 0 : i32
    return %c0_i32, %c0_i32_0 : i32, i32
  }
  func.func @transform_4(%arg0: i32) -> (i32, i32) {
    %c0_i32 = arith.constant 0 : i32
    %c0_i32_0 = arith.constant 0 : i32
    %c0_i32_1 = arith.constant 0 : i32
    return %c0_i32, %c0_i32_0 : i32, i32
  }
  func.func @transform_5(%arg0: i32) -> (i32, i32) {
    %c0_i32 = arith.constant 0 : i32
    %c0_i32_0 = arith.constant 0 : i32
    return %arg0, %c0_i32 : i32, i32
  }
}

</mosaic_0001>

<bundles_post_ra>
// kernel: _lambda_.1
= control target key start
LH: loop header
LB: loop body
LE: loop exit
PB: predicated region body
PF: predicated region fallthrough
CT: control target
= control target key end

     0   :  { %10 = vsyncpa [#allocation3], 0  ;;  %s703_s18 = smov 0   ;;  %s781_s0 = inlined_call_operand.vmem [shape: bf16[32,32], index: 0, kind: input, shape index: {}]   ;;  %s782_s1 = inlined_call_operand.vmem [shape: bf16[32,128], index: 1, kind: input, shape index: {}]   ;;  %s783_s2 = inlined_call_operand.vmem [shape: f32[1,128], index: 2, kind: input, shape index: {}, may-alias: {2,4}]   ;;  %s784_s3 = inlined_call_operand.hbm [shape: bf16[128,128], index: 3, kind: input, shape index: {}]   ;;  %s785_s4 = inlined_call_operand.vmem [shape: f32[1,128], index: 4, kind: input, shape index: {}, may-alias: {2,4}]   ;;  %s786_s5 = inlined_call_operand.vmem [shape: bf16[32,128], index: 5, kind: output, shape index: {}]  }
   0x1 LB: > { %s514_s19 = sadd.s32 4294967295, %s666_s18   ;;  %p516_p0 = scmp.ge.s32.totalorder %s666_s18, 1  ;;  %s666_s18 = sphi %s703_s18, %s16_s18  }
   0x2   : > { %p157_p1 = scmp.lt.s32.totalorder %s666_s18, 3  ;;  %s668_s20 = smov [#allocation2]  }
   0x3   : > { %s175_s21 = sshll.u32 %s668_s20, 4  ;;  %p717_p3 = scmp.eq.s32.totalorder %s514_s19, 0  ;;  %s176_s21 = int_to_ptr.vmem [resolvable:$true] %s175_s21 }
   0x4   : > { %p711_p2 = pnand %p516_p0, %p157_p1  ;;  %s628_s27 = scalar_lea.hbm %s784_s3, 1024 }
   0x5   : > { %s791_s23 = scalar_select %p717_p3, 1, 0 }
   0x6   : > { %s790_s22 = scalar_select %p711_p2, 1, 0 }
   0x7   : > { %p594_p4 = pneg %p711_p2  ;;  %p629_p6 = scmp.ne.s32.totalorder %s784_s3, %s628_s27 }
   0x8   : > { %p635_p10 = scmp.lt.u32.totalorder %s628_s27, %s784_s3 }
   0x9   : > { %p725_p5 = pnand %p717_p3, %p594_p4 }
   0xb   : > { %p630_p7 = pneg %p725_p5 }
   0xd   : > { %p631_p8 = pnand %p630_p7, %p629_p6 }
   0xf   : > { %p632_p9 = pneg %p631_p8 }
  0x11   : > { %p637_p11 = pnand %p635_p10, %p632_p9 }
  0x13   : > { %640 = shalt.err (!%p637_p11)
}
  0x14   : > { %s641_s7 = scalar_lea.vmem %s176_s21, 1024  ;;  %p649_p1 = scmp.lt.s32.totalorder %s176_s21, %s176_s21 }
  0x15   : > { %p642_p12 = scmp.ne.s32.totalorder %s176_s21, %s641_s7  ;;  %p650_p4 = scmp.lt.s32.totalorder %s641_s7, %s641_s7 }
  0x17   : > { %p644_p13 = pnand %p642_p12, %p630_p7  ;;  %p651_p3 = por %p650_p4, %p649_p1 }
  0x19   : > { %p645_p0 = pneg %p644_p13 }
  0x1b   : > { %p652_p2 = pnand %p651_p3, %p645_p0 }
  0x1d   : > { %655 = shalt.err (!%p652_p2)
}
  0x1e   : > { %s669_s8 = smov 64   ;;  %s670_s9 = smov 4  }
  0x1f   : > { %597 = dma.hbm_to_vmem [thread:$0]  (!%p725_p5), %s784_s3, 1024, %s176_s21, [#allocation3], %s669_s8, %s669_s8, %s670_s9  }
  0x20   : > { %p793_p6 = scmp.ne.s32.totalorder %s790_s22, 0 }
  0x21   : > { %p794_p8 = scmp.ne.s32.totalorder (!%p793_p6), %s791_s23, 0 }
  0x22   : > { %203 = sbr.rel (%p793_p6) target bundleno = 502 (0x1f6), region = 40 }
  0x29   : > { %661 = dma.done.wait (%p794_p8), [#allocation3], 1024  }
  0x2a   : > { %663 = vsyncadd (%p794_p8), [#allocation3], 4294966272  ;;  %s521_s12 = sshll.u32 %s514_s19, 1  ;;  %v671_v0 = vmov 0.0   ;;  %vm672_vm0 = vmmov 0   ;;  %v613_v1 = vld [vmem:[%s782_s1] sm:$0xff]  }
  0x2b   : > { %562 = vmatprep.subr.bf16.mxu0 %v671_v0  ;;  %566 = vmatprep.mubr.msk.bf16.mxu0 %vm672_vm0, %v671_v0  ;;  %p232_p2 = scmp.lt.s32.totalorder %s521_s12, 3  ;;  %v614_v2 = vld [vmem:[%s782_s1 + $0x8] sm:$0xff]   ;;  %v616_v3 = vld [vmem:[#allocation2] sm:$0xff]   ;;  %v617_v5 = vld [vmem:[#allocation2 + $0x8] sm:$0xff]   ;;  %vm274_vm1 = vcmask 261120  }
  0x2c   : > { %570 = vmatprep.subr.bf16.mxu1 %v671_v0  ;;  %586 = vmatprep.mubr.msk.bf16.mxu1 %vm672_vm0, %v671_v0  ;;  %v618_v6 = vld [vmem:[#allocation2 + $0x10] sm:$0xff]   ;;  %v619_v7 = vld [vmem:[#allocation2 + $0x18] sm:$0xff]   ;;  %v620_v8 = vld [vmem:[#allocation2 + $0x20] sm:$0xff]  }
  0x2d   : > { %s796_s12 = smov (!%p232_p2, %s521_s12), 3  ;;  %563 = vmatpush3.bf16.msra.mxu0 %v613_v1  ;;  %571 = vmatpush3.bf16.msra.mxu1 %v616_v3  ;;  %v621_v9 = vld [vmem:[#allocation2 + $0x28] sm:$0xff]   ;;  %v622_v10 = vld [vmem:[#allocation2 + $0x30] sm:$0xff]   ;;  %v623_v11 = vld [vmem:[#allocation2 + $0x38] sm:$0xff]  }
  0x2e   : > { %s522_s13 = sshll.u32 %s796_s12, 2  ;;  %564 = vmatprep.subr.bf16.mxu0 %v671_v0  ;;  %572 = vmatprep.subr.bf16.mxu1 %v671_v0  ;;  %v525_v12 = vld [vmem:[%s783_s2] ss:$0 sm:$0xff] }
  0x2f   : > { %s235_s19 = scalar_lea.vmem %s781_s0, %s522_s13  ;;  %v530_v22 = vld [vmem:[%s785_s4] ss:$0 sm:$0xff]  ;;  %s241_s28 = scalar_lea.vmem %s786_s5, %s522_s13 }
  0x30   : > { %v615_v4 = vld [vmem:[%s235_s19] sm:$0xff]  }
  0x31   : > { %565 = vmatpush3.bf16.msra.mxu0 %v614_v2  ;;  %573 = vmatpush3.bf16.msra.mxu1 %v617_v5 }
  0x32   : > { %574 = vmatprep.subr.bf16.mxu1 %v671_v0 }
  0x34   : > { %567 = vmatmul.mubr.msk.bf16.vlgmr.msra.gmra.mrb[0].mxu0 %vm274_vm1, %v615_v4 }
  0x35   : > { %575 = vmatpush3.bf16.msra.mxu1 %v618_v6 }
  0x36   : > { %576 = vmatprep.subr.bf16.mxu1 %v671_v0 }
  0x39   : > { %577 = vmatpush3.bf16.msra.mxu1 %v619_v7 }
  0x3a   : > { %578 = vmatprep.subr.bf16.mxu1 %v671_v0 }
  0x3d   : > { %579 = vmatpush3.bf16.msra.mxu1 %v620_v8 }
  0x3e   : > { %580 = vmatprep.subr.bf16.mxu1 %v671_v0 }
  0x41   : > { %581 = vmatpush3.bf16.msra.mxu1 %v621_v9 }
  0x42   : > { %582 = vmatprep.subr.bf16.mxu1 %v671_v0 }
  0x45   : > { %583 = vmatpush3.bf16.msra.mxu1 %v622_v10 }
  0x46   : > { %584 = vmatprep.subr.bf16.mxu1 %v671_v0 }
  0x49   : > { %585 = vmatpush3.bf16.msra.mxu1 %v623_v11 }
 0x107   : > { %v312_v13 = vpop.f32.mrb[0].mxu0 }
 0x108   : > { %v313_v14 = vadd.f32 %v525_v12, %v312_v13  ;;  %v568_v15 = vpop.f32.mrb[1].mxu0 }
 0x109   : > { %v315_v16 = vpop.f32.mrb[2].mxu0 }
 0x10a   : > { %v316_v17 = vadd.f32 %v525_v12, %v315_v16  ;;  %v569_v18 = vpop.f32.mrb[3].mxu0  ;;  %624 = vtanh.f32 %v313_v14 }
 0x10c   : > { %626 = vtanh.f32 %v316_v17 }
 0x114   : > { %v625_v19 = vpop.eup %624 }
 0x116   : > { %v627_v20 = vpop.eup %626 }
 0x117   : > { %v321_v21 = vpack.c.bf16 %v627_v20, %v625_v19 }
 0x119   : > { %587 = vmatmul.mubr.bf16.vlgmr.msra.gmra.mrb[0].mxu1 %v321_v21 }
 0x1ec   : > { %v427_v23 = vpop.f32.mrb[0].mxu1 }
 0x1ed   : > { %v428_v24 = vadd.f32 %v530_v22, %v427_v23  ;;  %v588_v25 = vpop.f32.mrb[1].mxu1 }
 0x1ee   : > { %v430_v26 = vpop.f32.mrb[2].mxu1 }
 0x1ef   : > { %v431_v27 = vadd.f32 %v530_v22, %v430_v26  ;;  %v589_v28 = vpop.f32.mrb[3].mxu1  ;;  %v434_v29 = vadd.f32 %v625_v19, %v428_v24 }
 0x1f1   : > { %v435_v30 = vadd.f32 %v627_v20, %v431_v27 }
 0x1f3   : > { %v548_v31 = vpack.c.bf16 %v435_v30, %v434_v29 }
 0x1f5   : > { %549 = vst [vmem:[%s241_s28] sm:$0xff] %v548_v31  }
 0x1f6 PF: > { %s16_s18 = sadd.s32 1, %s666_s18  }
 0x1f7   : > { %p13_p3 = scmp.ge.s32.totalorder %s16_s18, 4  }
 0x1f9   :  { %15 = sbr.rel (!%p13_p3) target bundleno = 1 (0x1), region = 75 }
 0x200   :  { %468 = vsyncpa [#allocation3], 1 }
 0x201   :  { %470 = vsyncpa [#allocation3 + $0x1], 1 }

</bundles_post_ra>
